<compile_context>
chip_gen: v6e
topology: v6e:2x2x1
jax: 0.10.0
libtpu: 0.0.40
codegen_flags: <defaults>
</compile_context>

<pallas_src>
import functools

import jax
import jax.numpy as jnp
from jax.experimental import pallas as pl
from jax.experimental.pallas import tpu as pltpu


def _round_up(n: int, m: int) -> int:
    return ((n + m - 1) // m) * m


def _cdiv(a: int, b: int) -> int:
    return -(-a // b)


def _device_defaults():
    """Per-TPU-generation tuning knobs (safe fallback if the query fails)."""
    kind = ""
    try:
        kind = jax.devices()[0].device_kind.lower()
    except Exception:  # pragma: no cover - defensive
        pass
    if "v2" in kind or "v3" in kind:
        return {"vmem_cap": 16 << 20, "mxu_align": 128, "block_m": 256}
    if "v4" in kind or "v5" in kind:
        # v4/v5e/v5p: 128 MiB VMEM, 128-wide MXU passes.
        return {"vmem_cap": 128 << 20, "mxu_align": 128, "block_m": 512}
    if "v6" in kind:
        # v6e: 128 MiB VMEM, 2x(256x256) MXU -> 256 alignment for dims >= 128.
        return {"vmem_cap": 128 << 20, "mxu_align": 256, "block_m": 512}
    # v7x (or unknown): 64 MiB VMEM per TensorCore, 2x(256x256) MXU, 2 TCs.
    return {"vmem_cap": 64 << 20, "mxu_align": 256, "block_m": 256}


def _pad_dim(d: int, mxu_align: int) -> int:
    # Lane/contraction padding: minimum 128; 256 on v6e/v7x once the real dim
    # is itself >= 128 (tiny dims keep 128 so we do not pay pure zero padding).
    if mxu_align > 128 and d >= 128:
        return _round_up(d, mxu_align)
    return _round_up(d, 128)


def prepare_classification_params(w1, b1, w2, b2):
    """One-time padding + bf16 cast of the weights.

    Hoisted out of the forward so the per-call path never re-materializes
    zero-padded weight copies in HBM. Zero padding is mathematically inert:
    extra x cols hit zero w1 rows, padded hidden units have zero bias and zero
    w2 rows, and padded output cols are sliced off after the kernel.
    """
    cfg = _device_defaults()
    align = cfg["mxu_align"]
    in_features, hidden = w1.shape
    assert w2.shape[0] == hidden
    num_classes = w2.shape[1]

    k_pad = _pad_dim(in_features, align)
    h_pad = _pad_dim(hidden, align)
    c_pad = _pad_dim(num_classes, align)

    w1p = jnp.pad(w1.astype(jnp.bfloat16),
                  ((0, k_pad - in_features), (0, h_pad - hidden)))
    w2p = jnp.pad(w2.astype(jnp.bfloat16),
                  ((0, h_pad - hidden), (0, c_pad - num_classes)))
    b1p = jnp.pad(jnp.reshape(b1, (1, -1)).astype(jnp.float32),
                  ((0, 0), (0, h_pad - hidden)))
    b2p = jnp.pad(jnp.reshape(b2, (1, -1)).astype(jnp.float32),
                  ((0, 0), (0, c_pad - num_classes)))
    return w1p, b1p, w2p, b2p


def _choose_k_block(k_pad: int, h_pad: int, vmem_cap: int, max_k_block):
    """Largest K block (multiple of 128, dividing k_pad) whose w1 tile(s) fit."""
    budget = int(0.35 * vmem_cap)
    cap = k_pad if max_k_block is None else min(max_k_block, k_pad)
    units = k_pad // 128
    for nk in range(1, units + 1):
        if units % nk:
            continue
        kb = (units // nk) * 128
        bufs = 1 if nk == 1 else 2          # streamed w1 is double-buffered
        if kb <= cap and kb * h_pad * 2 * bufs <= budget:
            return kb
    return 128


def classification_model_kernel(x_ref, w1_ref, b1_ref, w2_ref, b2_ref,
                                out_ref, h_acc):
    k = pl.program_id(1)

    @pl.when(k == 0)
    def _init():
        h_acc[...] = jnp.zeros_like(h_acc)

    # backbone Linear: accumulate x @ w1 over the K grid axis (bf16 operands
    # on the MXU, f32 accumulation in VMEM scratch).
    h_acc[...] += jnp.dot(x_ref[...], w1_ref[...],
                          preferred_element_type=jnp.float32)

    @pl.when(k == pl.num_programs(1) - 1)
    def _finalize():
        h = jnp.maximum(h_acc[...] + b1_ref[...], 0.0)          # bias + ReLU
        logits = jnp.dot(h.astype(jnp.bfloat16), w2_ref[...],   # clf head
                         preferred_element_type=jnp.float32)
        out_ref[...] = (logits + b2_ref[...]).astype(out_ref.dtype)


@functools.partial(
    jax.jit,
    static_argnames=("num_classes", "block_m", "max_k_block", "logits_dtype"))
def classification_model_forward(x, w1p, b1p, w2p, b2p, *, num_classes,
                                 block_m=None, max_k_block=None,
                                 logits_dtype=jnp.float32):
    cfg = _device_defaults()
    vmem_cap = cfg["vmem_cap"]
    if block_m is None:
        block_m = cfg["block_m"]

    batch, in_features = x.shape
    k_pad, h_pad = w1p.shape
    c_pad = w2p.shape[1]
    out_bytes = jnp.dtype(logits_dtype).itemsize

    # ---- K tiling: stream w1 only when it cannot sit resident in VMEM -------
    kb = _choose_k_block(k_pad, h_pad, vmem_cap, max_k_block)
    nk = k_pad // kb
    w1_bufs = (1 if nk == 1 else 2) * kb * h_pad * 2             # bf16

    # ---- batch tile from an explicit VMEM budget ----------------------------
    resident = h_pad * c_pad * 2 + (h_pad + c_pad) * 4           # w2 + b1 + b2 (1 buffer)
    per_row = (2 * kb * 2                                        # 2x x tile (bf16)
               + 2 * c_pad * out_bytes                           # 2x out tile
               + h_pad * 4 + h_pad * 2)                          # f32 h acc + bf16 cast
    budget = int(0.70 * vmem_cap)
    bm_cap = (budget - resident - w1_bufs) // per_row
    bm_cap = max(8, (bm_cap // 8) * 8)

    b8 = _round_up(batch, 8)
    bm_max = max(8, min(block_m, bm_cap))
    nb = _cdiv(b8, bm_max)
    if nb == 1 and b8 >= 16:
        nb = 2          # >=2 grid steps: feeds v7x's 2nd TC, overlaps x/out DMA
    bm = _round_up(_cdiv(b8, nb), 8)   # minimizes last-tile padding waste
    b_pad = bm * nb

    # Pad x only when needed (skipped entirely for already-aligned shapes).
    xb = x.astype(jnp.bfloat16)
    if batch != b_pad or in_features != k_pad:
        xb = jnp.pad(xb, ((0, b_pad - batch), (0, k_pad - in_features)))

    need = resident + w1_bufs + bm * per_row
    vmem_limit = int(min(0.85 * vmem_cap, max(1.4 * need, 16 << 20)))

    out_padded = pl.pallas_call(
        classification_model_kernel,
        out_shape=jax.ShapeDtypeStruct((b_pad, c_pad), logits_dtype),
        grid=(nb, nk),
        in_specs=[
            # x tile walks batch and K.
            pl.BlockSpec((bm, kb), lambda i, k: (i, k)),
            # w1: resident (single-buffered) when nk == 1, streamed otherwise.
            pl.BlockSpec((kb, h_pad), lambda i, k: (k, 0),
                         pipeline_mode=pl.Buffered(1 if nk == 1 else 2)),
            # b1 / w2 / b2: constant index_map -> resident, single-buffered.
            pl.BlockSpec((1, h_pad), lambda i, k: (0, 0),
                         pipeline_mode=pl.Buffered(1)),
            pl.BlockSpec((h_pad, c_pad), lambda i, k: (0, 0),
                         pipeline_mode=pl.Buffered(1)),
            pl.BlockSpec((1, c_pad), lambda i, k: (0, 0),
                         pipeline_mode=pl.Buffered(1)),
        ],
        out_specs=pl.BlockSpec((bm, c_pad), lambda i, k: (i, 0)),
        scratch_shapes=[pltpu.VMEM((bm, h_pad), jnp.float32)],
        compiler_params=pltpu.CompilerParams(
            dimension_semantics=("parallel", "arbitrary"),
            vmem_limit_bytes=vmem_limit),
    )(xb, w1p, b1p, w2p, b2p)

    return out_padded[:batch, :num_classes]


def init_linear_params(key, fan_in, fan_out):
    # PyTorch nn.Linear default init: U(-1/sqrt(fan_in), 1/sqrt(fan_in))
    kw, kb = jax.random.split(key)
    bound = 1.0 / jnp.sqrt(jnp.asarray(fan_in, jnp.float32))
    w = jax.random.uniform(kw, (fan_in, fan_out), jnp.float32, -bound, bound)
    b = jax.random.uniform(kb, (1, fan_out), jnp.float32, -bound, bound)
    return w, b


if __name__ == "__main__":
    key = jax.random.PRNGKey(0)
    k_x, k_l1, k_l2, k_x2, k_l3, k_l4 = jax.random.split(key, 6)

    # --- case 1: small shapes, w1 fully resident (single K step) ------------
    batch, in_features, hidden, num_classes = 8, 32, 64, 8
    x = jax.random.normal(k_x, (batch, in_features), jnp.float32)
    w1, b1 = init_linear_params(k_l1, in_features, hidden)
    w2, b2 = init_linear_params(k_l2, hidden, num_classes)

    params = prepare_classification_params(w1, b1, w2, b2)   # one-time padding
    out = jax.block_until_ready(
        classification_model_forward(x, *params, num_classes=num_classes))

    ref = jnp.maximum(x @ w1 + b1, 0.0) @ w2 + b2             # plain-JAX reference
    assert out.shape == (batch, num_classes)
    assert jnp.allclose(out, ref, atol=5e-2, rtol=5e-2), (
        float(jnp.max(jnp.abs(out - ref))))

    # --- case 2: exercises the K-tiled accumulator path + batch splitting ----
    batch2, in2, hid2, nc2 = 20, 200, 96, 5
    x2 = jax.random.normal(k_x2, (batch2, in2), jnp.float32)
    w1b, b1b = init_linear_params(k_l3, in2, hid2)
    w2b, b2b = init_linear_params(k_l4, hid2, nc2)

    params2 = prepare_classification_params(w1b, b1b, w2b, b2b)
    out2 = jax.block_until_ready(
        classification_model_forward(x2, *params2, num_classes=nc2,
                                     max_k_block=128))
    ref2 = jnp.maximum(x2 @ w1b + b1b, 0.0) @ w2b + b2b
    assert out2.shape == (batch2, nc2)
    assert jnp.allclose(out2, ref2, atol=5e-2, rtol=5e-2), (
        float(jnp.max(jnp.abs(out2 - ref2))))

    # TODO(synk): compute_loss (CrossEntropyLoss) is training-only glue, not
    # part of the forward pass; it is not implemented as a kernel.
    print("KERNEL_OK")
</pallas_src>

<mosaic_0001>
module attributes {stable_mosaic.version = 11 : i64} {
  func.func @classification_model_kernel(%arg0: i32, %arg1: i32, %arg2: memref<8x128xbf16, #tpu.memory_space<vmem>>, %arg3: memref<128x128xbf16, #tpu.memory_space<vmem>>, %arg4: memref<1x128xf32, #tpu.memory_space<vmem>>, %arg5: memref<128x128xbf16, #tpu.memory_space<vmem>>, %arg6: memref<1x128xf32, #tpu.memory_space<vmem>>, %arg7: memref<8x128xf32, #tpu.memory_space<vmem>>, %arg8: memref<8x128xf32, #tpu.memory_space<vmem>>) attributes {dimension_semantics = [#tpu.dimension_semantics<parallel>, #tpu.dimension_semantics<arbitrary>], iteration_bounds = array<i64: 1, 1>, scalar_prefetch = 0 : i64, scratch_operands = 1 : i64, tpu.core_type = #tpu.core_type<tc>, window_params = [{transform_indices = @transform_0, window_bounds = array<i64: 8, 128>}, {pipeline_mode = #tpu.pipeline_mode<synchronous>, transform_indices = @transform_1, window_bounds = array<i64: 128, 128>}, {pipeline_mode = #tpu.pipeline_mode<synchronous>, transform_indices = @transform_2, window_bounds = array<i64: 1, 128>}, {pipeline_mode = #tpu.pipeline_mode<synchronous>, transform_indices = @transform_3, window_bounds = array<i64: 128, 128>}, {pipeline_mode = #tpu.pipeline_mode<synchronous>, transform_indices = @transform_4, window_bounds = array<i64: 1, 128>}, {transform_indices = @transform_5, window_bounds = array<i64: 8, 128>}]} {
    %c0_i32 = arith.constant 0 : i32
    %0 = arith.cmpi eq, %arg1, %c0_i32 : i32
    %1 = arith.extui %0 : i1 to i32
    %c0_i32_0 = arith.constant 0 : i32
    %2 = arith.cmpi ne, %1, %c0_i32_0 : i32
    scf.if %2 {
      %cst_10 = arith.constant 0.000000e+00 : f32
      %12 = vector.broadcast %cst_10 : f32 to vector<8x128xf32>
      %c0_11 = arith.constant 0 : index
      %c0_12 = arith.constant 0 : index
      %13 = vector.load %arg8[%c0_11, %c0_12] : memref<8x128xf32, #tpu.memory_space<vmem>>, vector<8x128xf32>
      tpu.vector_store %arg8[%c0_11, %c0_12], %12 {strides = array<i32>} : memref<8x128xf32, #tpu.memory_space<vmem>>, vector<8x128xf32>,
    } else {
    }
    %c0 = arith.constant 0 : index
    %c0_1 = arith.constant 0 : index
    %3 = vector.load %arg8[%c0, %c0_1] : memref<8x128xf32, #tpu.memory_space<vmem>>, vector<8x128xf32>
    %c0_2 = arith.constant 0 : index
    %c0_3 = arith.constant 0 : index
    %4 = vector.load %arg2[%c0_2, %c0_3] : memref<8x128xbf16, #tpu.memory_space<vmem>>, vector<8x128xbf16>
    %c0_4 = arith.constant 0 : index
    %c0_5 = arith.constant 0 : index
    %5 = vector.load %arg3[%c0_4, %c0_5] : memref<128x128xbf16, #tpu.memory_space<vmem>>, vector<128x128xbf16>
    %cst = arith.constant dense<0.000000e+00> : vector<8x128xf32>
    %6 = tpu.matmul %4, %5, %cst {dimension_numbers = #tpu.dot_dimension_numbers<[1], [0], [0], [1], [0, 0, 1, 1], [], []>} : vector<8x128xbf16>, vector<128x128xbf16>, vector<8x128xf32> -> vector<8x128xf32>
    %7 = arith.addf %3, %6 : vector<8x128xf32>
    %c0_6 = arith.constant 0 : index
    %c0_7 = arith.constant 0 : index
    %8 = vector.load %arg8[%c0_6, %c0_7] : memref<8x128xf32, #tpu.memory_space<vmem>>, vector<8x128xf32>
    tpu.vector_store %arg8[%c0_6, %c0_7], %7 {strides = array<i32>} : memref<8x128xf32, #tpu.memory_space<vmem>>, vector<8x128xf32>,
    %c0_i32_8 = arith.constant 0 : i32
    %9 = arith.cmpi eq, %arg1, %c0_i32_8 : i32
    %10 = arith.extui %9 : i1 to i32
    %c0_i32_9 = arith.constant 0 : i32
    %11 = arith.cmpi ne, %10, %c0_i32_9 : i32
    scf.if %11 {
      %c0_10 = arith.constant 0 : index
      %c0_11 = arith.constant 0 : index
      %12 = vector.load %arg8[%c0_10, %c0_11] : memref<8x128xf32, #tpu.memory_space<vmem>>, vector<8x128xf32>
      %c0_12 = arith.constant 0 : index
      %c0_13 = arith.constant 0 : index
      %13 = vector.load %arg4[%c0_12, %c0_13] : memref<1x128xf32, #tpu.memory_space<vmem>>, vector<1x128xf32>
      %14 = vector.broadcast %13 : vector<1x128xf32> to vector<8x128xf32>
      %15 = arith.addf %12, %14 : vector<8x128xf32>
      %cst_14 = arith.constant 0.000000e+00 : f32
      %16 = vector.broadcast %cst_14 : f32 to vector<8x128xf32>
      %17 = arith.maximumf %15, %16 : vector<8x128xf32>
      %18 = arith.truncf %17 : vector<8x128xf32> to vector<8x128xbf16>
      %c0_15 = arith.constant 0 : index
      %c0_16 = arith.constant 0 : index
      %19 = vector.load %arg5[%c0_15, %c0_16] : memref<128x128xbf16, #tpu.memory_space<vmem>>, vector<128x128xbf16>
      %cst_17 = arith.constant dense<0.000000e+00> : vector<8x128xf32>
      %20 = tpu.matmul %18, %19, %cst_17 {dimension_numbers = #tpu.dot_dimension_numbers<[1], [0], [0], [1], [0, 0, 1, 1], [], []>} : vector<8x128xbf16>, vector<128x128xbf16>, vector<8x128xf32> -> vector<8x128xf32>
      %c0_18 = arith.constant 0 : index
      %c0_19 = arith.constant 0 : index
      %21 = vector.load %arg6[%c0_18, %c0_19] : memref<1x128xf32, #tpu.memory_space<vmem>>, vector<1x128xf32>
      %22 = vector.broadcast %21 : vector<1x128xf32> to vector<8x128xf32>
      %23 = arith.addf %20, %22 : vector<8x128xf32>
      %c0_20 = arith.constant 0 : index
      %c0_21 = arith.constant 0 : index
      %24 = vector.load %arg7[%c0_20, %c0_21] : memref<8x128xf32, #tpu.memory_space<vmem>>, vector<8x128xf32>
      tpu.vector_store %arg7[%c0_20, %c0_21], %23 {strides = array<i32>} : memref<8x128xf32, #tpu.memory_space<vmem>>, vector<8x128xf32>,
    } else {
    }
    return
  }
  func.func @transform_0(%arg0: i32, %arg1: i32) -> (i32, i32) {
    %c0_i32 = arith.constant 0 : i32
    return %arg0, %arg1 : i32, i32
  }
  func.func @transform_1(%arg0: i32, %arg1: i32) -> (i32, i32) {
    %c0_i32 = arith.constant 0 : i32
    %c0_i32_0 = arith.constant 0 : i32
    return %arg1, %c0_i32 : i32, i32
  }
  func.func @transform_2(%arg0: i32, %arg1: i32) -> (i32, i32) {
    %c0_i32 = arith.constant 0 : i32
    %c0_i32_0 = arith.constant 0 : i32
    %c0_i32_1 = arith.constant 0 : i32
    return %c0_i32, %c0_i32_0 : i32, i32
  }
  func.func @transform_3(%arg0: i32, %arg1: i32) -> (i32, i32) {
    %c0_i32 = arith.constant 0 : i32
    %c0_i32_0 = arith.constant 0 : i32
    %c0_i32_1 = arith.constant 0 : i32
    return %c0_i32, %c0_i32_0 : i32, i32
  }
  func.func @transform_4(%arg0: i32, %arg1: i32) -> (i32, i32) {
    %c0_i32 = arith.constant 0 : i32
    %c0_i32_0 = arith.constant 0 : i32
    %c0_i32_1 = arith.constant 0 : i32
    return %c0_i32, %c0_i32_0 : i32, i32
  }
  func.func @transform_5(%arg0: i32, %arg1: i32) -> (i32, i32) {
    %c0_i32 = arith.constant 0 : i32
    %c0_i32_0 = arith.constant 0 : i32
    return %arg0, %c0_i32 : i32, i32
  }
}

</mosaic_0001>

<bundles_post_ra>
// kernel: classification_model_forward.1
= control target key start
LH: loop header
LB: loop body
LE: loop exit
PB: predicated region body
PF: predicated region fallthrough
CT: control target
= control target key end

     0   :  { %10 = vsyncpa [#allocation4], 0  ;;  %s525_s0 = inlined_call_operand.vmem [shape: bf16[8,128], index: 0, kind: input, shape index: {}]   ;;  %s526_s1 = inlined_call_operand.hbm [shape: bf16[128,128], index: 1, kind: input, shape index: {}]   ;;  %s527_s2 = inlined_call_operand.vmem [shape: f32[1,128], index: 2, kind: input, shape index: {}]   ;;  %s528_s3 = inlined_call_operand.hbm [shape: bf16[128,128], index: 3, kind: input, shape index: {}]   ;;  %s529_s4 = inlined_call_operand.vmem [shape: f32[1,128], index: 4, kind: input, shape index: {}]   ;;  %s530_s5 = inlined_call_operand.hbm [shape: f32[8,128], index: 5, kind: output, shape index: {}]  }
   0x1   :  { %11 = vsyncpa [#allocation7], 0 }
   0x2   :  { %12 = vsyncpa [#allocation5], 0  ;;  %s470_s18 = smov [#allocation3]  }
   0x3   :  { %s20_s19 = sshll.u32 %s470_s18, 4  ;;  %s21_s19 = int_to_ptr.vmem [resolvable:$true] %s20_s19 }
   0x4   :  { %s412_s20 = scalar_lea.vmem %s21_s19, 1024  ;;  %p417_p1 = scmp.lt.s32.totalorder %s21_s19, %s21_s19 }
   0x5   :  { %p413_p0 = scmp.ne.s32.totalorder %s21_s19, %s412_s20  ;;  %p418_p2 = scmp.lt.s32.totalorder %s412_s20, %s412_s20 }
   0x7   :  { %p419_p3 = por %p418_p2, %p417_p1 }
   0x9   :  { %p420_p4 = pnand %p419_p3, %p413_p0 }
   0xb   :  { %423 = shalt.err (!%p420_p4)
}
   0xc   :  { %s471_s21 = smov 64   ;;  %s472_s22 = smov 4  }
   0xd   :  { %26 = dma.hbm_to_vmem [thread:$0]  %s526_s1, 1024, %s21_s19, [#allocation4], %s471_s21, %s471_s21, %s472_s22  }
   0xe   :  { %s473_s25 = smov [#allocation6]  }
   0xf   :  { %s34_s26 = sshll.u32 %s473_s25, 4  ;;  %s35_s26 = int_to_ptr.vmem [resolvable:$true] %s34_s26 }
  0x10   :  { %s432_s27 = scalar_lea.vmem %s35_s26, 1024  ;;  %p437_p6 = scmp.lt.s32.totalorder %s35_s26, %s35_s26 }
  0x11   :  { %p433_p5 = scmp.ne.s32.totalorder %s35_s26, %s432_s27  ;;  %p438_p7 = scmp.lt.s32.totalorder %s432_s27, %s432_s27 }
  0x13   :  { %p439_p8 = por %p438_p7, %p437_p6 }
  0x15   :  { %p440_p9 = pnand %p439_p8, %p433_p5 }
  0x17   :  { %443 = shalt.err (!%p440_p9)
}
  0x18   :  { %40 = dma.hbm_to_vmem [thread:$0]  %s528_s3, 1024, %s35_s26, [#allocation7], %s471_s21, %s471_s21, %s472_s22  }
  0x19   :  { %464 = dma.done.wait [#allocation4], 1024  }
  0x1a   :  { %465 = vsyncadd [#allocation4], 4294966272 }
  0x1b   :  { %466 = dma.done.wait [#allocation7], 1024  }
  0x1c   :  { %467 = vsyncadd [#allocation7], 4294966272  ;;  %v474_v0 = vmov 0.0   ;;  %vm475_vm0 = vmmov 0   ;;  %v388_v1 = vld [vmem:[#allocation3 + $0x38] sm:$0xff]   ;;  %v389_v2 = vld [vmem:[#allocation3 + $0x30] sm:$0xff]  }
  0x1d   :  { %341 = vmatprep.subr.bf16.mxu0 %v474_v0  ;;  %357 = vmatprep.mubr.msk.bf16.mxu0 %vm475_vm0, %v474_v0  ;;  %v390_v3 = vld [vmem:[#allocation3 + $0x28] sm:$0xff]   ;;  %v396_v4 = vld [vmem:[#allocation6 + $0x38] sm:$0xff]   ;;  %v391_v5 = vld [vmem:[#allocation3 + $0x20] sm:$0xff]   ;;  %s476_s8 = smov [#allocation8]  }
  0x1e   :  { %361 = vmatprep.subr.bf16.mxu1 %v474_v0  ;;  %377 = vmatprep.mubr.msk.bf16.mxu1 %vm475_vm0, %v474_v0  ;;  %v397_v6 = vld [vmem:[#allocation6 + $0x30] sm:$0xff]   ;;  %v392_v7 = vld [vmem:[#allocation3 + $0x18] sm:$0xff]   ;;  %v398_v8 = vld [vmem:[#allocation6 + $0x28] sm:$0xff]   ;;  %s295_s9 = sshll.u32 %s476_s8, 4  ;;  %s296_s9 = int_to_ptr.vmem [resolvable:$true] %s295_s9 }
  0x1f   :  { %342 = vmatpush3.bf16.msra.mxu0 %v388_v1  ;;  %362 = vmatpush3.bf16.msra.mxu1 %v396_v4  ;;  %v393_v9 = vld [vmem:[#allocation3 + $0x10] sm:$0xff]   ;;  %v399_v10 = vld [vmem:[#allocation6 + $0x20] sm:$0xff]   ;;  %v394_v11 = vld [vmem:[#allocation3 + $0x8] sm:$0xff]   ;;  %p449_p11 = scmp.lt.s32.totalorder %s296_s9, %s296_s9 }
  0x20   :  { %343 = vmatprep.subr.bf16.mxu0 %v474_v0  ;;  %363 = vmatprep.subr.bf16.mxu1 %v474_v0  ;;  %v400_v12 = vld [vmem:[#allocation6 + $0x18] sm:$0xff]   ;;  %v395_v13 = vld [vmem:[#allocation3] sm:$0xff]   ;;  %v401_v14 = vld [vmem:[#allocation6 + $0x10] sm:$0xff]  }
  0x21   :  { %v56_v15 = vld [vmem:[%s525_s0] sm:$0xf]  ;;  %v402_v16 = vld [vmem:[#allocation6 + $0x8] sm:$0xff]  }
  0x22   :  { %v403_v17 = vld [vmem:[#allocation6] sm:$0xff]  }
  0x23   :  { %344 = vmatpush3.bf16.msra.mxu0 %v389_v2  ;;  %364 = vmatpush3.bf16.msra.mxu1 %v397_v6  ;;  %v313_v18 = vld [vmem:[%s527_s2] ss:$0 sm:$0xff]  ;;  %s444_s2 = scalar_lea.vmem %s296_s9, 128 }
  0x24   :  { %345 = vmatprep.subr.bf16.mxu0 %v474_v0  ;;  %365 = vmatprep.subr.bf16.mxu1 %v474_v0  ;;  %v314_v26 = vld [vmem:[%s529_s4] ss:$0 sm:$0xff]  ;;  %p445_p10 = scmp.ne.s32.totalorder %s296_s9, %s444_s2  ;;  %p450_p12 = scmp.lt.s32.totalorder %s444_s2, %s444_s2 }
  0x26   :  { %p451_p13 = por %p450_p12, %p449_p11 }
  0x27   :  { %346 = vmatpush3.bf16.msra.mxu0 %v390_v3  ;;  %366 = vmatpush3.bf16.msra.mxu1 %v398_v8 }
  0x28   :  { %347 = vmatprep.subr.bf16.mxu0 %v474_v0  ;;  %367 = vmatprep.subr.bf16.mxu1 %v474_v0  ;;  %p452_p0 = pnand %p451_p13, %p445_p10 }
  0x2b   :  { %348 = vmatpush3.bf16.msra.mxu0 %v391_v5  ;;  %368 = vmatpush3.bf16.msra.mxu1 %v399_v10 }
  0x2c   :  { %349 = vmatprep.subr.bf16.mxu0 %v474_v0  ;;  %369 = vmatprep.subr.bf16.mxu1 %v474_v0 }
  0x2f   :  { %350 = vmatpush3.bf16.msra.mxu0 %v392_v7  ;;  %370 = vmatpush3.bf16.msra.mxu1 %v400_v12 }
  0x30   :  { %351 = vmatprep.subr.bf16.mxu0 %v474_v0  ;;  %371 = vmatprep.subr.bf16.mxu1 %v474_v0 }
  0x33   :  { %352 = vmatpush3.bf16.msra.mxu0 %v393_v9  ;;  %372 = vmatpush3.bf16.msra.mxu1 %v401_v14 }
  0x34   :  { %353 = vmatprep.subr.bf16.mxu0 %v474_v0  ;;  %373 = vmatprep.subr.bf16.mxu1 %v474_v0 }
  0x37   :  { %354 = vmatpush3.bf16.msra.mxu0 %v394_v11  ;;  %374 = vmatpush3.bf16.msra.mxu1 %v402_v16 }
  0x38   :  { %355 = vmatprep.subr.bf16.mxu0 %v474_v0  ;;  %375 = vmatprep.subr.bf16.mxu1 %v474_v0 }
  0x3b   :  { %356 = vmatpush3.bf16.msra.mxu0 %v395_v13  ;;  %376 = vmatpush3.bf16.msra.mxu1 %v403_v17 }
  0x3e   :  { %358 = vmatmul.mubr.bf16.vlgmr.msra.gmra.mxu0 %v56_v15 }
  0xfe   :  { %v155_v19 = vpop.f32.mrf.mxu0 }
  0xff   :  { %v174_v20 = vadd.f32 %v313_v18, %v155_v19 }
 0x100   :  { %v359_v21 = vpop.f32.mrf.mxu0 }
 0x101   :  { %v175_v22 = vmax.f32 %v174_v20, 0.0 }
 0x102   :  { %v158_v23 = vpop.f32.mrf.mxu0 }
 0x103   :  { %v176_v24 = vpack.c.bf16 %v175_v22, %v175_v22 }
 0x104   :  { %v360_v25 = vpop.f32.mrf.mxu0 }
 0x105   :  { %378 = vmatmul.mubr.bf16.vlgmr.msra.gmra.mxu1 %v176_v24 }
 0x1c5   :  { %v282_v27 = vpop.f32.mrf.mxu1 }
 0x1c6   :  { %v283_v28 = vadd.f32 %v314_v26, %v282_v27 }
 0x1c7   :  { %v379_v29 = vpop.f32.mrf.mxu1 }
 0x1c8   :  { %288 = vst [vmem:[#allocation8] sm:$0xff] %v283_v28 }
 0x1c9   :  { %v285_v30 = vpop.f32.mrf.mxu1 }
 0x1ca   :  { %455 = shalt.err (!%p452_p0)
}
 0x1cb   :  { %298 = dma.vmem_to_hbm [thread:$0]  %s296_s9, 128, %s530_s5, [#allocation5]   ;;  %v380_v31 = vpop.f32.mrf.mxu1 }
 0x1cc   :  { %468 = dma.done.wait [#allocation5], 128  }
 0x1cd   :  { %469 = vsyncadd [#allocation5], 4294967168 }
 0x1ce   :  { %302 = vsyncpa [#allocation4], 1 }
 0x1cf   :  { %303 = vsyncpa [#allocation7], 1 }
 0x1d0   :  { %304 = vsyncpa [#allocation5], 1 }

</bundles_post_ra>
